<compile_context>
chip_gen: v7x
topology: tpu7x:2x2x1
jax: 0.10.0
libtpu: 0.0.40
codegen_flags: <defaults>
</compile_context>

<pallas_src>
import math

import jax
import jax.numpy as jnp
from jax.experimental import pallas as pl
from jax.experimental.pallas import tpu as pltpu


OUT_PAD = 128  # lane width of the zero-padded classifier head (matmul only)


# ---------------------------------------------------------------------------
# Kernel
# ---------------------------------------------------------------------------
def mlp_kernel(x_ref, w1_ref, b1_ref, w2_ref, b2_ref, w3_ref, b3_ref, o_ref):
    # In-kernel f32 -> bf16 cast of the activation tile (MXU path stays bf16,
    # accumulation f32).  Doing the cast here avoids a separate XLA cast pass.
    x = x_ref[...].astype(jnp.bfloat16)

    # Layer 1: Linear (BN folded) + ReLU           (Dropout = identity in eval)
    h1 = jnp.dot(x, w1_ref[...], preferred_element_type=jnp.float32)
    h1 = jnp.maximum(h1 + b1_ref[...], 0.0)

    # Layer 2: Linear (BN folded) + ReLU
    h2 = jnp.dot(h1.astype(jnp.bfloat16), w2_ref[...],
                 preferred_element_type=jnp.float32)
    h2 = jnp.maximum(h2 + b2_ref[...], 0.0)

    # Layer 3: Linear -> logits.  Matmul against the 128-lane zero-padded head,
    # then store only the real logit columns (narrow output block).
    out = jnp.dot(h2.astype(jnp.bfloat16), w3_ref[...],
                  preferred_element_type=jnp.float32)
    out = out + b3_ref[...]
    o_ref[...] = out[:, : o_ref.shape[-1]].astype(o_ref.dtype)


# ---------------------------------------------------------------------------
# Wrapper
# ---------------------------------------------------------------------------
def _round_up(n, m):
    return ((n + m - 1) // m) * m


def gpu_mlp_classifier_forward(x, kernel_params, *, tb=2048):
    """x: (B, input_dim) float32 -> logits (B, num_classes) float32."""
    (w1, b1, w2, b2, w3p, b3p, num_classes) = kernel_params
    B, input_dim = x.shape
    hidden_dim = w1.shape[1]
    h2_dim = w2.shape[1]

    # Batch tile: multiple of 8, big enough to amortize per-step overhead, but
    # capped at ceil(B/2) so the parallel grid axis has >= 2 steps (megacore).
    TB = max(8, min(tb, _round_up(pl.cdiv(B, 2), 8)))
    grid = (pl.cdiv(B, TB),)  # ragged last block handled by Pallas (no jnp.pad)

    flops = 2 * B * (input_dim * hidden_dim + hidden_dim * h2_dim
                     + h2_dim * OUT_PAD)
    bytes_accessed = (x.size * 4
                      + (w1.size + w2.size + w3p.size) * 2
                      + (b1.size + b2.size + b3p.size) * 4
                      + B * num_classes * 4)

    return pl.pallas_call(
        mlp_kernel,
        out_shape=jax.ShapeDtypeStruct((B, num_classes), jnp.float32),
        grid_spec=pltpu.PrefetchScalarGridSpec(
            num_scalar_prefetch=0,
            grid=grid,
            in_specs=[
                # batch-tiled f32 activation stream (cast to bf16 in-kernel)
                pl.BlockSpec((TB, input_dim), lambda i: (i, 0)),
                # weights / biases: grid-invariant index_map -> VMEM-resident
                pl.BlockSpec((input_dim, hidden_dim), lambda i: (0, 0)),
                pl.BlockSpec((1, hidden_dim), lambda i: (0, 0)),
                pl.BlockSpec((hidden_dim, h2_dim), lambda i: (0, 0)),
                pl.BlockSpec((1, h2_dim), lambda i: (0, 0)),
                pl.BlockSpec((h2_dim, OUT_PAD), lambda i: (0, 0)),
                pl.BlockSpec((1, OUT_PAD), lambda i: (0, 0)),
            ],
            # Narrow logits writeback: 8 B/row instead of a padded f32 block
            # plus a post-kernel strided slice.
            out_specs=pl.BlockSpec((TB, num_classes), lambda i: (i, 0)),
        ),
        compiler_params=pltpu.CompilerParams(
            dimension_semantics=("parallel",),
            vmem_limit_bytes=32 * 1024 * 1024,
        ),
        cost_estimate=pl.CostEstimate(
            flops=flops, transcendentals=0, bytes_accessed=bytes_accessed),
    )(x, w1, b1, w2, b2, w3p, b3p)


# ---------------------------------------------------------------------------
# Parameter construction (matches PyTorch _init_weights + fresh BatchNorm1d)
# ---------------------------------------------------------------------------
def xavier_uniform(key, fan_in, fan_out):
    # torch.nn.init.xavier_uniform_ bound; stored transposed as (in, out).
    bound = math.sqrt(6.0 / (fan_in + fan_out))
    return jax.random.uniform(key, (fan_in, fan_out),
                              minval=-bound, maxval=bound, dtype=jnp.float32)


def make_raw_params(key, input_dim=256, hidden_dim=128, eps=1e-5):
    """Un-folded f32 params mirroring the PyTorch module at init (eval mode)."""
    h2_dim = hidden_dim // 2
    k1, k2, k3 = jax.random.split(key, 3)

    w1 = xavier_uniform(k1, input_dim, hidden_dim)
    b1 = jnp.zeros((1, hidden_dim), jnp.float32)
    w2 = xavier_uniform(k2, hidden_dim, h2_dim)
    b2 = jnp.zeros((1, h2_dim), jnp.float32)
    w3 = xavier_uniform(k3, h2_dim, 2)
    b3 = jnp.zeros((1, 2), jnp.float32)

    def bn_fold(dim):
        gamma = jnp.ones((1, dim), jnp.float32)
        beta = jnp.zeros((1, dim), jnp.float32)
        r_mean = jnp.zeros((1, dim), jnp.float32)
        r_var = jnp.ones((1, dim), jnp.float32)
        scale = gamma / jnp.sqrt(r_var + eps)
        shift = beta - r_mean * scale
        return scale, shift

    s1, t1 = bn_fold(hidden_dim)
    s2, t2 = bn_fold(h2_dim)
    return (w1, b1, s1, t1, w2, b2, s2, t2, w3, b3)


def prepare_kernel_params(raw):
    """Fold BN into weights/biases, cast weights to bf16, pad the head for the MXU."""
    (w1, b1, s1, t1, w2, b2, s2, t2, w3, b3) = raw
    num_classes = w3.shape[1]
    h2_dim = w3.shape[0]

    # BN fold: y = (x @ w + b) * s + t  ==  x @ (w*s) + (b*s + t)
    w1f = (w1 * s1).astype(jnp.bfloat16)
    b1f = (b1 * s1 + t1).astype(jnp.float32)
    w2f = (w2 * s2).astype(jnp.bfloat16)
    b2f = (b2 * s2 + t2).astype(jnp.float32)

    # Zero-pad the 2-wide classifier head to 128 lanes for the matmul; the
    # padded columns are never stored (kernel writes only num_classes lanes).
    w3p = jnp.zeros((h2_dim, OUT_PAD), jnp.float32).at[:, :num_classes].set(w3)
    b3p = jnp.zeros((1, OUT_PAD), jnp.float32).at[:, :num_classes].set(b3)
    w3p = w3p.astype(jnp.bfloat16)

    return (w1f, b1f, w2f, b2f, w3p, b3p, num_classes)


def reference_forward(x, raw):
    """Pure-JAX f32 reference (Linear -> BN -> ReLU -> ... -> Linear)."""
    (w1, b1, s1, t1, w2, b2, s2, t2, w3, b3) = raw
    h1 = jnp.maximum((x @ w1 + b1) * s1 + t1, 0.0)
    h2 = jnp.maximum((h1 @ w2 + b2) * s2 + t2, 0.0)
    return h2 @ w3 + b3


# ---------------------------------------------------------------------------
if __name__ == "__main__":
    key = jax.random.PRNGKey(0)
    k_x, k_p = jax.random.split(key)

    INPUT_DIM, HIDDEN_DIM = 256, 128
    raw_params = make_raw_params(k_p, input_dim=INPUT_DIM, hidden_dim=HIDDEN_DIM)
    kernel_params = prepare_kernel_params(raw_params)

    # B=64: batch divides the tile evenly.  B=50: exercises the ragged last
    # block (no jnp.pad; garbage OOB rows discarded by dropped OOB writes).
    for B in (64, 50):
        x = jax.random.normal(jax.random.fold_in(k_x, B), (B, INPUT_DIM),
                              dtype=jnp.float32)
        out = jax.block_until_ready(gpu_mlp_classifier_forward(x, kernel_params))
        ref = reference_forward(x, raw_params)
        assert out.shape == (B, 2), out.shape
        # bf16 matmuls -> ~1e-2-level error vs the f32 reference.
        assert jnp.allclose(out, ref, atol=5e-2, rtol=5e-2), \
            f"mismatch vs reference at B={B}"

    print("KERNEL_OK")
</pallas_src>

<mosaic_0001>
module attributes {stable_mosaic.version = 11 : i64} {
  func.func @mlp_kernel(%arg0: i32, %arg1: memref<32x256xf32, #tpu.memory_space<vmem>>, %arg2: memref<256x128xbf16, #tpu.memory_space<vmem>>, %arg3: memref<1x128xf32, #tpu.memory_space<vmem>>, %arg4: memref<128x64xbf16, #tpu.memory_space<vmem>>, %arg5: memref<1x64xf32, #tpu.memory_space<vmem>>, %arg6: memref<64x128xbf16, #tpu.memory_space<vmem>>, %arg7: memref<1x128xf32, #tpu.memory_space<vmem>>, %arg8: memref<32x2xf32, #tpu.memory_space<vmem>>) attributes {dimension_semantics = [#tpu.dimension_semantics<parallel>], iteration_bounds = array<i64: 2>, scalar_prefetch = 0 : i64, scratch_operands = 0 : i64, tpu.core_type = #tpu.core_type<tc>, window_params = [{transform_indices = @transform_0, window_bounds = array<i64: 32, 256>}, {pipeline_mode = #tpu.pipeline_mode<synchronous>, transform_indices = @transform_1, window_bounds = array<i64: 256, 128>}, {pipeline_mode = #tpu.pipeline_mode<synchronous>, transform_indices = @transform_2, window_bounds = array<i64: 1, 128>}, {pipeline_mode = #tpu.pipeline_mode<synchronous>, transform_indices = @transform_3, window_bounds = array<i64: 128, 64>}, {pipeline_mode = #tpu.pipeline_mode<synchronous>, transform_indices = @transform_4, window_bounds = array<i64: 1, 64>}, {pipeline_mode = #tpu.pipeline_mode<synchronous>, transform_indices = @transform_5, window_bounds = array<i64: 64, 128>}, {pipeline_mode = #tpu.pipeline_mode<synchronous>, transform_indices = @transform_6, window_bounds = array<i64: 1, 128>}, {transform_indices = @transform_7, window_bounds = array<i64: 32, 2>}]} {
    %c0 = arith.constant 0 : index
    %c0_0 = arith.constant 0 : index
    %0 = vector.load %arg1[%c0, %c0_0] : memref<32x256xf32, #tpu.memory_space<vmem>>, vector<32x256xf32>
    %1 = arith.truncf %0 : vector<32x256xf32> to vector<32x256xbf16>
    %c0_1 = arith.constant 0 : index
    %c0_2 = arith.constant 0 : index
    %2 = vector.load %arg2[%c0_1, %c0_2] : memref<256x128xbf16, #tpu.memory_space<vmem>>, vector<256x128xbf16>
    %cst = arith.constant dense<0.000000e+00> : vector<32x128xf32>
    %3 = tpu.matmul %1, %2, %cst {dimension_numbers = #tpu.dot_dimension_numbers<[1], [0], [0], [1], [0, 0, 1, 1], [], []>} : vector<32x256xbf16>, vector<256x128xbf16>, vector<32x128xf32> -> vector<32x128xf32>
    %c0_3 = arith.constant 0 : index
    %c0_4 = arith.constant 0 : index
    %4 = vector.load %arg3[%c0_3, %c0_4] : memref<1x128xf32, #tpu.memory_space<vmem>>, vector<1x128xf32>
    %5 = vector.broadcast %4 : vector<1x128xf32> to vector<32x128xf32>
    %6 = arith.addf %3, %5 : vector<32x128xf32>
    %cst_5 = arith.constant 0.000000e+00 : f32
    %7 = vector.broadcast %cst_5 : f32 to vector<32x128xf32>
    %8 = arith.maximumf %6, %7 : vector<32x128xf32>
    %9 = arith.truncf %8 : vector<32x128xf32> to vector<32x128xbf16>
    %c0_6 = arith.constant 0 : index
    %c0_7 = arith.constant 0 : index
    %10 = vector.load %arg4[%c0_6, %c0_7] : memref<128x64xbf16, #tpu.memory_space<vmem>>, vector<128x64xbf16>
    %cst_8 = arith.constant dense<0.000000e+00> : vector<32x64xf32>
    %11 = tpu.matmul %9, %10, %cst_8 {dimension_numbers = #tpu.dot_dimension_numbers<[1], [0], [0], [1], [0, 0, 1, 1], [], []>} : vector<32x128xbf16>, vector<128x64xbf16>, vector<32x64xf32> -> vector<32x64xf32>
    %c0_9 = arith.constant 0 : index
    %c0_10 = arith.constant 0 : index
    %12 = vector.load %arg5[%c0_9, %c0_10] : memref<1x64xf32, #tpu.memory_space<vmem>>, vector<1x64xf32>
    %13 = vector.broadcast %12 : vector<1x64xf32> to vector<32x64xf32>
    %14 = arith.addf %11, %13 : vector<32x64xf32>
    %cst_11 = arith.constant 0.000000e+00 : f32
    %15 = vector.broadcast %cst_11 : f32 to vector<32x64xf32>
    %16 = arith.maximumf %14, %15 : vector<32x64xf32>
    %17 = arith.truncf %16 : vector<32x64xf32> to vector<32x64xbf16>
    %c0_12 = arith.constant 0 : index
    %c0_13 = arith.constant 0 : index
    %18 = vector.load %arg6[%c0_12, %c0_13] : memref<64x128xbf16, #tpu.memory_space<vmem>>, vector<64x128xbf16>
    %cst_14 = arith.constant dense<0.000000e+00> : vector<32x128xf32>
    %19 = tpu.matmul %17, %18, %cst_14 {dimension_numbers = #tpu.dot_dimension_numbers<[1], [0], [0], [1], [0, 0, 1, 1], [], []>} : vector<32x64xbf16>, vector<64x128xbf16>, vector<32x128xf32> -> vector<32x128xf32>
    %c0_15 = arith.constant 0 : index
    %c0_16 = arith.constant 0 : index
    %20 = vector.load %arg7[%c0_15, %c0_16] : memref<1x128xf32, #tpu.memory_space<vmem>>, vector<1x128xf32>
    %21 = vector.broadcast %20 : vector<1x128xf32> to vector<32x128xf32>
    %22 = arith.addf %19, %21 : vector<32x128xf32>
    %23 = vector.extract_strided_slice %22 {offsets = [0, 0], sizes = [32, 2], strides = [1, 1]} : vector<32x128xf32> to vector<32x2xf32>
    %c0_17 = arith.constant 0 : index
    %c0_18 = arith.constant 0 : index
    %24 = vector.load %arg8[%c0_17, %c0_18] : memref<32x2xf32, #tpu.memory_space<vmem>>, vector<32x2xf32>
    tpu.vector_store %arg8[%c0_17, %c0_18], %23 {strides = array<i32>} : memref<32x2xf32, #tpu.memory_space<vmem>>, vector<32x2xf32>,
    return
  }
  func.func @transform_0(%arg0: i32) -> (i32, i32) {
    %c0_i32 = arith.constant 0 : i32
    %c0_i32_0 = arith.constant 0 : i32
    return %arg0, %c0_i32 : i32, i32
  }
  func.func @transform_1(%arg0: i32) -> (i32, i32) {
    %c0_i32 = arith.constant 0 : i32
    %c0_i32_0 = arith.constant 0 : i32
    %c0_i32_1 = arith.constant 0 : i32
    return %c0_i32, %c0_i32_0 : i32, i32
  }
  func.func @transform_2(%arg0: i32) -> (i32, i32) {
    %c0_i32 = arith.constant 0 : i32
    %c0_i32_0 = arith.constant 0 : i32
    %c0_i32_1 = arith.constant 0 : i32
    return %c0_i32, %c0_i32_0 : i32, i32
  }
  func.func @transform_3(%arg0: i32) -> (i32, i32) {
    %c0_i32 = arith.constant 0 : i32
    %c0_i32_0 = arith.constant 0 : i32
    %c0_i32_1 = arith.constant 0 : i32
    return %c0_i32, %c0_i32_0 : i32, i32
  }
  func.func @transform_4(%arg0: i32) -> (i32, i32) {
    %c0_i32 = arith.constant 0 : i32
    %c0_i32_0 = arith.constant 0 : i32
    %c0_i32_1 = arith.constant 0 : i32
    return %c0_i32, %c0_i32_0 : i32, i32
  }
  func.func @transform_5(%arg0: i32) -> (i32, i32) {
    %c0_i32 = arith.constant 0 : i32
    %c0_i32_0 = arith.constant 0 : i32
    %c0_i32_1 = arith.constant 0 : i32
    return %c0_i32, %c0_i32_0 : i32, i32
  }
  func.func @transform_6(%arg0: i32) -> (i32, i32) {
    %c0_i32 = arith.constant 0 : i32
    %c0_i32_0 = arith.constant 0 : i32
    %c0_i32_1 = arith.constant 0 : i32
    return %c0_i32, %c0_i32_0 : i32, i32
  }
  func.func @transform_7(%arg0: i32) -> (i32, i32) {
    %c0_i32 = arith.constant 0 : i32
    %c0_i32_0 = arith.constant 0 : i32
    return %arg0, %c0_i32 : i32, i32
  }
}

</mosaic_0001>

<bundles_post_ra>
// kernel: tpu_custom_call.1
= control target key start
LH: loop header
LB: loop body
LE: loop exit
PB: predicated region body
PF: predicated region fallthrough
CT: control target
= control target key end

     0   :  { %12 = vsyncpa [#allocation3], 0  ;;  %s1376_s0 = inlined_call_operand.hbm [shape: f32[64,256], index: 0, kind: input, shape index: {}]   ;;  %s1377_s1 = inlined_call_operand.hbm [shape: bf16[256,128], index: 1, kind: input, shape index: {}]   ;;  %s1378_s2 = inlined_call_operand.vmem [shape: f32[1,128], index: 2, kind: input, shape index: {}]   ;;  %s1379_s3 = inlined_call_operand.vmem [shape: bf16[128,64], index: 3, kind: input, shape index: {}]   ;;  %s1380_s4 = inlined_call_operand.vmem [shape: f32[1,64], index: 4, kind: input, shape index: {}]   ;;  %s1381_s5 = inlined_call_operand.vmem [shape: bf16[64,128], index: 5, kind: input, shape index: {}]   ;;  %s1382_s6 = inlined_call_operand.vmem [shape: f32[1,128], index: 6, kind: input, shape index: {}]   ;;  %s1383_s7 = inlined_call_operand.vmem [shape: f32[64,2], index: 7, kind: output, shape index: {}]  }
   0x1   :  { %14 = vsyncpa [#allocation3 + $0x1], 0 }
   0x2   :  { %15 = vsyncpa [#allocation5], 0  ;;  %s1176_s24 = smov 0   ;;  %s1178_s25 = smov 0  }
   0x3   :  { %s1180_s26 = smov 0   ;;  %s1182_s27 = smov 0  }
   0x4 LB: > { %s823_s28 = sadd.s32 4294967295, %s1128_s27   ;;  %p41_p0 = scmp.ne.s32.totalorder %s1120_s25, %s1116_s24  ;;  %s1128_s27 = sphi %s1182_s27, %s1399_s27   ;;  %s1124_s26 = sphi %s1180_s26, %s1398_s26   ;;  %s1120_s25 = sphi %s1178_s25, %s1397_s25   ;;  %s1116_s24 = sphi %s1176_s24, %s1396_s24  }
   0x5   : > { %p1198_p1 = scmp.eq.s32.totalorder %s823_s28, 0  ;;  %p825_p2 = scmp.ge.s32.totalorder %s1128_s27, 1 }
   0x6   : > { %p204_p3 = scmp.lt.s32.totalorder %s1128_s27, 3  ;;  %s1130_s9 = smov [#allocation4]  }
   0x7   : > { %s1388_s29 = scalar_select %p1198_p1, 1, 0 }
   0x8   : > { %p1206_p4 = por %p1198_p1, %p41_p0  ;;  %p1210_p5 = pnand %p825_p2, %p204_p3 }
   0x9   : > { %s216_s10 = sshll.u32 %s1130_s9, 4  ;;  %s1223_s12 = sadd.s32 1, %s1128_s27   ;;  %s217_s10 = int_to_ptr.vmem [resolvable:$true] %s216_s10 }
   0xa   : > { %s1389_s30 = scalar_select %p1206_p4, 1, 0 }
   0xb   : > { %s1390_s8 = scalar_select %p1210_p5, 1, 0 }
   0xc   : > { %p956_p6 = pneg %p1210_p5  ;;  %s28_s13 = sadd.s32 1, %s1124_s26 }
   0xd   : > { %s25_s14 = ssub.s32 %s1128_s27, %s1223_s12  ;;  %s1032_s17 = scalar_lea.hbm %s1377_s1, 2048 }
   0xe   : > { %p1218_p7 = pnand %p956_p6, %p1198_p1  ;;  %p1033_p8 = scmp.ne.s32.totalorder %s1377_s1, %s1032_s17 }
   0xf   : > { %p1039_p12 = scmp.lt.u32.totalorder %s1032_s17, %s1377_s1 }
  0x10   : > { %p1034_p9 = pneg %p1218_p7 }
  0x12   : > { %p1035_p10 = pnand %p1034_p9, %p1033_p8 }
  0x14   : > { %p1036_p11 = pneg %p1035_p10 }
  0x16   : > { %p1041_p13 = pnand %p1039_p12, %p1036_p11 }
  0x18   : > { %1044 = shalt.err (!%p1041_p13)
}
  0x19   : > { %s1045_s22 = scalar_lea.vmem %s217_s10, 2048  ;;  %p1053_p6 = scmp.lt.s32.totalorder %s217_s10, %s217_s10 }
  0x1a   : > { %p1046_p0 = scmp.ne.s32.totalorder %s217_s10, %s1045_s22  ;;  %p1054_p1 = scmp.lt.s32.totalorder %s1045_s22, %s1045_s22 }
  0x1c   : > { %p1048_p2 = pnand %p1046_p0, %p1034_p9  ;;  %p1055_p4 = por %p1054_p1, %p1053_p6 }
  0x1e   : > { %p1049_p3 = pneg %p1048_p2 }
  0x20   : > { %p1056_p5 = pnand %p1055_p4, %p1049_p3 }
  0x22   : > { %1059 = shalt.err (!%p1056_p5)
}
  0x23   : > { %s1131_s23 = smov 64   ;;  %s1132_s24 = smov 4  }
  0x24   : > { %959 = dma.hbm_to_vmem [thread:$0]  (!%p1218_p7), %s1377_s1, 2048, %s217_s10, [#allocation5], %s1131_s23, %s1131_s23, %s1132_s24  }
  0x25   : > { %p26_p8 = scmp.eq.s32.totalorder %s25_s14, 0  ;;  %p35_p9 = scmp.ne.s32.totalorder %s1124_s26, %s1120_s25 }
  0x26   : > { %p36_p1 = scmp.eq.s32.totalorder %s1128_s27, 0  ;;  %p965_p4 = scmp.lt.s32.totalorder %s1128_s27, 2 }
  0x27   : > { %s1249_s16 = scalar_select %p26_p8, %s1124_s26, %s28_s13  }
  0x28   : > { %p37_p5 = por %p36_p1, %p35_p9  ;;  %s245_s17 = sand.u32 1, %s1124_s26  }
  0x29   : > { %s828_s18 = sshll.u32 %s245_s17, 6  ;;  %s873_s19 = sshll.u32 %s1128_s27, 10 }
  0x2a   : > { %s1256_s22 = scalar_lea.hbm %s1376_s0, %s873_s19  ;;  %s249_s10 = scalar_lea.vmem [#allocation2], %s828_s18 }
  0x2b   : > { %s257_s11 = sshll.u32 %s249_s10, 4  ;;  %p1260_p7 = pnand %p965_p4, %p37_p5  ;;  %s1258_s11 = int_to_ptr.vmem [resolvable:$true] %s257_s11 }
  0x2c   : > { %s1264_s14 = scalar_lea.sflag [#allocation3], %s245_s17  ;;  %s1060_s23 = scalar_lea.hbm %s1256_s22, 1024 }
  0x2d   : > { %p1061_p10 = scmp.ne.s32.totalorder %s1256_s22, %s1060_s23  ;;  %p1062_p11 = pneg %p1260_p7 }
  0x2e   : > { %s1065_s15 = scalar_lea.hbm %s1376_s0, 2048  ;;  %p1066_p0 = scmp.lt.u32.totalorder %s1256_s22, %s1376_s0 }
  0x2f   : > { %p1063_p12 = pnand %p1062_p11, %p1061_p10  ;;  %p1067_p2 = scmp.lt.u32.totalorder %s1065_s15, %s1060_s23 }
  0x30   : > { %p1069_p6 = scmp.lt.u32.totalorder %s1060_s23, %s1256_s22 }
  0x31   : > { %p1064_p13 = pneg %p1063_p12  ;;  %p1068_p3 = por %p1067_p2, %p1066_p0 }
  0x33   : > { %p1070_p8 = por %p1069_p6, %p1068_p3 }
  0x35   : > { %p1071_p9 = pnand %p1070_p8, %p1064_p13 }
  0x37   : > { %1074 = shalt.err (!%p1071_p9)
}
  0x38   : > { %s1075_s17 = scalar_lea.vmem %s1258_s11, 1024  ;;  %s1133_s20 = smov [#allocation2]  }
  0x39   : > { %p1076_p1 = scmp.ne.s32.totalorder %s1258_s11, %s1075_s17  ;;  %s1080_s21 = sshll.u32 %s1133_s20, 4  ;;  %s1081_s21 = int_to_ptr.vmem [resolvable:$false] %s1080_s21 }
  0x3a   : > { %s1082_s10 = scalar_lea.vmem %s1081_s21, 2048  ;;  %p1083_p10 = scmp.lt.s32.totalorder %s1258_s11, %s1081_s21 }
  0x3b   : > { %p1078_p4 = pnand %p1076_p1, %p1062_p11  ;;  %p1084_p12 = scmp.lt.s32.totalorder %s1082_s10, %s1075_s17 }
  0x3d   : > { %p1079_p5 = pneg %p1078_p4  ;;  %p1085_p0 = por %p1084_p12, %p1083_p10 }
  0x3f   : > { %p1086_p2 = pnand %p1085_p0, %p1079_p5 }
  0x41   : > { %1089 = shalt.err (!%p1086_p2)
}
  0x42   : > { %s1134_s23 = smov 256   ;;  %s1135_s24 = smov 16  }
  0x43   : > { %963 = dma.hbm_to_vmem [thread:$0]  (!%p1260_p7), %s1256_s22, 1024, %s1258_s11, %s1264_s14, %s1134_s23, %s1134_s23, %s1135_s24  }
  0x44   : > { %p1393_p11 = scmp.ne.s32.totalorder %s1390_s8, 0 }
  0x45   : > { %s271_s9 = sand.u32 (!%p1393_p11), 1, %s1120_s25   ;;  %p1394_p13 = scmp.ne.s32.totalorder (!%p1393_p11), %s1389_s30, 0 }
  0x46   : > { %269 = sbr.rel (%p1393_p11) target bundleno = 785 (0x311), region = 48  ;;  %s833_s15 = sshll.u32 (!%p1393_p11), %s271_s9, 6 }
  0x47   : > { %s272_s18 = scalar_lea.sflag (!%p1393_p11), [#allocation3], %s271_s9  ;;  %s1295_s19 = scalar_lea.vmem (!%p1393_p11), [#allocation2], %s833_s15 }
  0x4d   : > { %1107 = dma.done.wait (%p1394_p13), %s272_s18, 1024  }
  0x4e   : > { %1109 = vsyncadd (%p1394_p13), %s272_s18, 4294966272  ;;  %p1395_p3 = scmp.ne.s32.totalorder %s1388_s29, 0 }
  0x50   : > { %1111 = dma.done.wait (%p1395_p3), [#allocation5], 2048  }
  0x51   : > { %1113 = vsyncadd (%p1395_p3), [#allocation5], 4294965248  ;;  %v1004_v0 = vld [vmem:[#allocation4 + $0x40] sm:$0xff]   ;;  %v1006_v2 = vld [vmem:[#allocation4 + $0x48] sm:$0xff]   ;;  %vm685_vm0 = vcmask 523264   ;;  %s835_s23 = sshll.u32 %s823_s28, 2 }
  0x52   : > { %v1005_v1 = vld [vmem:[#allocation4] sm:$0xff]   ;;  %874 = vmatprep.subr.bf16.mxu0 %v1004_v0  ;;  %v1007_v3 = vld [vmem:[#allocation4 + $0x8] sm:$0xff]   ;;  %v1008_v4 = vld [vmem:[#allocation4 + $0x50] sm:$0xff]   ;;  %p312_p7 = scmp.lt.s32.totalorder %s835_s23, 7  ;;  %vm741_vm1 = vcmask 15360  }
  0x53   : > { %875 = vmatpush3.bf16.msra.mxu0 %v1005_v1  ;;  %v1009_v5 = vld [vmem:[#allocation4 + $0x10] sm:$0xff]   ;;  %v1010_v6 = vld [vmem:[#allocation4 + $0x58] sm:$0xff]   ;;  %v1012_v8 = vld [vmem:[#allocation4 + $0x60] sm:$0xff]  }
  0x54   : > { %876 = vmatprep.subr.bf16.mxu0 %v1006_v2  ;;  %v1011_v7 = vld [vmem:[#allocation4 + $0x18] sm:$0xff]   ;;  %v1013_v9 = vld [vmem:[#allocation4 + $0x20] sm:$0xff]   ;;  %v1014_v10 = vld [vmem:[#allocation4 + $0x68] sm:$0xff]   ;;  %s1401_s23 = smov (!%p312_p7, %s835_s23), 7 }
  0x55   : > { %v319_v11 = vld [vmem:[%s1295_s19 + $0x8] sm:$0xff]  ;;  %v321_v12 = vld [vmem:[%s1295_s19 + $0x18] sm:$0xff]  ;;  %v1016_v15 = vld [vmem:[#allocation4 + $0x70] sm:$0xff]   ;;  %s836_s24 = sshll.u32 %s1401_s23, 3 }
  0x56   : > { %v327_v13 = vpack.c.bf16 %v321_v12, %v319_v11  ;;  %v1015_v14 = vld [vmem:[#allocation4 + $0x28] sm:$0xff]   ;;  %v1020_v16 = vld [vmem:[%s1379_s3] sm:$0xff]   ;;  %v1017_v18 = vld [vmem:[#allocation4 + $0x30] sm:$0xff]   ;;  %s315_s29 = scalar_lea.vmem %s1383_s7, %s836_s24 }
  0x57   : > { %877 = vmatpush3.bf16.msra.mxu0 %v1007_v3  ;;  %v1021_v17 = vld [vmem:[%s1379_s3 + $0x8] sm:$0xff]   ;;  %918 = vmatprep.subr.bf16.mxu1 %v1020_v16  ;;  %v1022_v19 = vld [vmem:[%s1379_s3 + $0x10] sm:$0xff]   ;;  %v1018_v20 = vld [vmem:[#allocation4 + $0x78] sm:$0xff]  }
  0x58   : > { %878 = vmatprep.subr.bf16.mxu0 %v1008_v4  ;;  %497 = vmatprep.mubr.bf16.mxu0 %v327_v13  ;;  %v1019_v21 = vld [vmem:[#allocation4 + $0x38] sm:$0xff]   ;;  %v318_v22 = vld [vmem:[%s1295_s19] sm:$0xff]  ;;  %v320_v23 = vld [vmem:[%s1295_s19 + $0x10] sm:$0xff] }
  0x59   : > { %919 = vmatpush3.bf16.msra.mxu1 %v1020_v16  ;;  %v323_v24 = vld [vmem:[%s1295_s19 + $0x28] sm:$0xff]  ;;  %v325_v25 = vld [vmem:[%s1295_s19 + $0x38] sm:$0xff]  ;;  %v326_v26 = vpack.c.bf16 %v320_v23, %v318_v22  ;;  %v322_v28 = vld [vmem:[%s1295_s19 + $0x20] sm:$0xff] }
  0x5a   : > { %920 = vmatprep.subr.bf16.mxu1 %v1021_v17  ;;  %v329_v27 = vpack.c.bf16 %v325_v25, %v323_v24  ;;  %v324_v29 = vld [vmem:[%s1295_s19 + $0x30] sm:$0xff]  ;;  %v1023_v31 = vld [vmem:[%s1379_s3 + $0x18] sm:$0xff]   ;;  %v1024_v32 = vld [vmem:[%s1379_s3 + $0x20] sm:$0xff]  }
  0x5b   : > { %879 = vmatpush3.bf16.msra.mxu0 %v1009_v5  ;;  %v328_v30 = vpack.c.bf16 %v324_v29, %v322_v28  ;;  %v1025_v33 = vld [vmem:[%s1379_s3 + $0x28] sm:$0xff]   ;;  %v1026_v34 = vld [vmem:[%s1379_s3 + $0x30] sm:$0xff]   ;;  %v1027_v35 = vld [vmem:[%s1379_s3 + $0x38] sm:$0xff]  }
  0x5c   : > { %880 = vmatprep.subr.bf16.mxu0 %v1010_v6  ;;  %v1028_v36 = vld [vmem:[%s1381_s5] sm:$0xff]   ;;  %v1029_v37 = vld [vmem:[%s1381_s5 + $0x8] sm:$0xff]   ;;  %v1030_v61 = vld [vmem:[%s1381_s5 + $0x10] sm:$0xff]  }
  0x5d   : > { %921 = vmatpush3.bf16.msra.mxu1 %v1021_v17  ;;  %v837_v40 = vld [vmem:[%s1378_s2] ss:$0 sm:$0xff]  ;;  %v1031_v62 = vld [vmem:[%s1381_s5 + $0x18] sm:$0xff]  }
  0x5e   : > { %922 = vmatprep.subr.bf16.mxu1 %v1022_v19  ;;  %v854_v63 = vld [vmem:[%s1380_s4] ss:$0 sm:$0xff] }
  0x5f   : > { %881 = vmatpush3.bf16.msra.mxu0 %v1011_v7 }
  0x60   : > { %882 = vmatprep.subr.bf16.mxu0 %v1012_v8 }
  0x61   : > { %923 = vmatpush3.bf16.msra.mxu1 %v1022_v19 }
  0x62   : > { %924 = vmatprep.subr.bf16.mxu1 %v1023_v31 }
  0x63   : > { %883 = vmatpush3.bf16.msra.mxu0 %v1013_v9 }
  0x64   : > { %884 = vmatprep.subr.bf16.mxu0 %v1014_v10 }
  0x65   : > { %925 = vmatpush3.bf16.msra.mxu1 %v1023_v31 }
  0x66   : > { %926 = vmatprep.subr.bf16.mxu1 %v1024_v32 }
  0x67   : > { %885 = vmatpush3.bf16.msra.mxu0 %v1015_v14  ;;  %v863_v14 = vld [vmem:[%s1382_s6] ss:$0 sm:$0xff] }
  0x68   : > { %886 = vmatprep.subr.bf16.mxu0 %v1016_v15 }
  0x69   : > { %927 = vmatpush3.bf16.msra.mxu1 %v1024_v32 }
  0x6a   : > { %928 = vmatprep.subr.bf16.mxu1 %v1025_v33 }
  0x6b   : > { %887 = vmatpush3.bf16.msra.mxu0 %v1017_v18 }
  0x6c   : > { %888 = vmatprep.subr.bf16.mxu0 %v1018_v20 }
  0x6d   : > { %929 = vmatpush3.bf16.msra.mxu1 %v1025_v33 }
  0x6e   : > { %930 = vmatprep.subr.bf16.mxu1 %v1026_v34 }
  0x6f   : > { %889 = vmatpush3.bf16.msra.mxu0 %v1019_v21 }
  0x70   : > { %938 = vmatprep.subr.bf16.mxu0 %v1028_v36 }
  0x71   : > { %931 = vmatpush3.bf16.msra.mxu1 %v1026_v34 }
  0x72   : > { %498 = vmatmul.mubr.bf16.vlgmr.msra.gmra.mrb[0].mxu0 %v326_v26  ;;  %932 = vmatprep.subr.bf16.mxu1 %v1027_v35 }
  0x73   : > { %505 = vmatprep.mubr.bf16.mxu0 %v329_v27  ;;  %939 = vmatpush3.bf16.msra.mxu0 %v1028_v36 }
  0x74   : > { %940 = vmatprep.subr.bf16.mxu0 %v1029_v37 }
  0x75   : > { %933 = vmatpush3.bf16.msra.mxu1 %v1027_v35 }
  0x77   : > { %941 = vmatpush3.bf16.msra.mxu0 %v1029_v37 }
  0x78   : > { %942 = vmatprep.subr.bf16.mxu0 %v1030_v61 }
  0x7a   : > { %506 = vmatmul.mubr.bf16.gmra.mrb[4].mxu0 %v328_v30 }
  0x7b   : > { %943 = vmatpush3.bf16.msra.mxu0 %v1030_v61 }
  0x7c   : > { %944 = vmatprep.subr.bf16.mxu0 %v1031_v62 }
  0x7f   : > { %945 = vmatpush3.bf16.msra.mxu0 %v1031_v62 }
 0x145   : > { %v890_v38 = vpop.f32.mrb[0].mxu0 }
 0x146   : > { %v891_v39 = vpop.f32.mrb[1].mxu0 }
 0x147   : > { %v892_v41 = vadd.f32 %v891_v39, %v890_v38  ;;  %v893_v42 = vpop.f32.mrb[2].mxu0 }
 0x148   : > { %v894_v43 = vpop.f32.mrb[3].mxu0 }
 0x149   : > { %v895_v44 = vadd.f32 %v894_v43, %v893_v42  ;;  %v500_v45 = vadd.f32 %v892_v41, %v837_v40 }
 0x14b   : > { %v503_v46 = vadd.f32 %v895_v44, %v837_v40  ;;  %v514_v48 = vmax.f32 %v500_v45, 0.0 }
 0x14d   : > { %v896_v47 = vpop.f32.mrb[4].mxu0  ;;  %v515_v49 = vmax.f32 %v503_v46, 0.0 }
 0x14e   : > { %v897_v50 = vpop.f32.mrb[5].mxu0 }
 0x14f   : > { %v898_v51 = vadd.f32 %v897_v50, %v896_v47  ;;  %v899_v52 = vpop.f32.mrb[6].mxu0  ;;  %v518_v53 = vpack.c.bf16 %v515_v49, %v514_v48 }
 0x150   : > { %v900_v54 = vpop.f32.mrb[7].mxu0 }
 0x151   : > { %v508_v55 = vadd.f32 %v898_v51, %v837_v40  ;;  %v901_v56 = vadd.f32 %v900_v54, %v899_v52  ;;  %934 = vmatprep.mubr.bf16.mxu1 %v518_v53 }
 0x153   : > { %v511_v57 = vadd.f32 %v901_v56, %v837_v40  ;;  %v516_v58 = vmax.f32 %v508_v55, 0.0 }
 0x155   : > { %v517_v59 = vmax.f32 %v511_v57, 0.0 }
 0x157   : > { %v519_v60 = vpack.c.bf16 %v517_v59, %v516_v58 }
 0x159   : > { %935 = vmatmul.mubr.bf16.vlgmr.msra.gmra.mrb[0].mxu1 %v519_v60 }
 0x22c   : > { %v936_v0 = vpop.f32.mrb[0].mxu1 }
 0x22d   : > { %v634_v1 = vadd.f32 %v936_v0, %v854_v63  ;;  %v625_v2 = vpop.f32.mrb[1].mxu1 }
 0x22e   : > { %v626_v3 = vadd.f32 %v854_v63, %v625_v2  ;;  %v937_v4 = vpop.f32.mrb[2].mxu1 }
 0x22f   : > { %v637_v5 = vadd.f32 %v937_v4, %v854_v63  ;;  %v628_v6 = vpop.f32.mrb[3].mxu1  ;;  %v642_v8 = vmax.f32 %v634_v1, 0.0 }
 0x230   : > { %v629_v7 = vadd.f32 %v854_v63, %v628_v6  ;;  %v640_v10 = vmax.f32 %v626_v3, 0.0 }
 0x231   : > { %v643_v9 = vmax.f32 %v637_v5, 0.0 }
 0x232   : > { %v641_v11 = vmax.f32 %v629_v7, 0.0 }
 0x233   : > { %v645_v12 = vpack.c.bf16 %v643_v9, %v642_v8 }
 0x234   : > { %v644_v13 = vpack.c.bf16 %v641_v11, %v640_v10 }
 0x236   : > { %946 = vmatprep.mubr.msk.bf16.mxu0 %vm685_vm0, %v644_v13 }
 0x237   : > { %947 = vmatmul.mubr.msk.bf16.vlgmr.msra.gmra.mrb[8].mxu0 %vm685_vm0, %v645_v12 }
 0x30a   : > { %v948_v15 = vpop.f32.mrb[8].mxu0 }
 0x30b   : > { %v726_v16 = vpop.f32.mrb[9].mxu0  ;;  %v735_v21 = vadd.f32 %v948_v15, %v863_v14 }
 0x30c   : > { %v727_v17 = vadd.f32 %v863_v14, %v726_v16  ;;  %v949_v18 = vpop.f32.mrb[10].mxu0 }
 0x30d   : > { %v729_v19 = vpop.f32.mrb[11].mxu0  ;;  %v738_v22 = vadd.f32 %v949_v18, %v863_v14  ;;  %744 = vst.msk [vmem:[%s315_s29 + $0x10] sm:$0xff] %vm741_vm1, %v735_v21 }
 0x30e   : > { %742 = vst.msk [vmem:[%s315_s29] sm:$0xff] %vm741_vm1, %v727_v17  ;;  %v730_v20 = vadd.f32 %v863_v14, %v729_v19 }
 0x30f   : > { %745 = vst.msk [vmem:[%s315_s29 + $0x18] sm:$0xff] %vm741_vm1, %v738_v22 }
 0x310   : > { %743 = vst.msk [vmem:[%s315_s29 + $0x8] sm:$0xff] %vm741_vm1, %v730_v20 }
 0x311 PF: > { %p18_p6 = scmp.ge.s32.totalorder %s1223_s12, 4   ;;  %s1396_s24 = smov %s1120_s25 }
 0x312   : > { %s1397_s25 = smov %s1124_s26  ;;  %s1398_s26 = smov %s1249_s16 }
 0x313   : > { %s1399_s27 = smov %s1223_s12  ;;  %20 = sbr.rel (!%p18_p6) target bundleno = 4 (0x4), region = 92 }
 0x31a   :  { %768 = vsyncpa [#allocation3], 1 }
 0x31b   :  { %770 = vsyncpa [#allocation3 + $0x1], 1 }
 0x31c   :  { %771 = vsyncpa [#allocation5], 1 }

</bundles_post_ra>
